<compile_context>
chip_gen: v6e
topology: v6e:2x2x1
jax: 0.10.0
libtpu: 0.0.40
codegen_flags: <defaults>
</compile_context>

<pallas_src>
import functools

import jax
import jax.numpy as jnp
from jax.experimental import pallas as pl
from jax.experimental.pallas import tpu as pltpu


def _round_up(x: int, m: int) -> int:
    return ((x + m - 1) // m) * m


def _actor_critic_kernel(x_ref, w_ref, b_ref, out_ref, *, n_states: int,
                         ns_pad: int, lw: int):
    """One batch tile: out = softmax(relu(x @ W1 + b1) @ W2 + b2, axis=-1).

    w_ref (bf16) packs [W1 ; W2] row-wise: rows [0, n_states) are W1, rows
    [ns_pad, ns_pad + lw) are W2 (ns_pad is n_states rounded up to 8 so the W2
    slice is sublane-aligned).  b_ref (f32) packs [b1 ; b2] as (2, lw); padded
    logit columns carry b2 = -inf so exp() of them is exactly 0.
    """
    x = x_ref[...].astype(jnp.bfloat16)                 # (tb, n_states)

    w1 = w_ref[0:n_states, :]                           # (n_states, lw) bf16, resident
    w2 = w_ref[ns_pad:ns_pad + lw, :]                   # (lw, lw)       bf16, resident
    b1 = b_ref[0:1, :]                                  # (1, lw) f32
    b2 = b_ref[1:2, :]                                  # (1, lw) f32 (-inf on pad cols)

    # fc1 + ReLU (bf16 MXU matmul, f32 accumulation; elementwise stays f32)
    h = jnp.dot(x, w1, preferred_element_type=jnp.float32)
    h = jnp.maximum(h + b1, 0.0)                        # (tb, lw)

    # fc2 (padded columns: 0 + (-inf) = -inf)
    logits = jnp.dot(h.astype(jnp.bfloat16), w2,
                     preferred_element_type=jnp.float32) + b2   # (tb, lw)

    # numerically-stable softmax along the last dim
    m = jnp.max(logits, axis=-1, keepdims=True)
    e = jnp.exp(logits - m)                             # pad cols -> exactly 0
    denom = jnp.sum(e, axis=-1, keepdims=True)
    inv = pl.reciprocal(denom, approx=True)             # EUP vrcp (free slot)
    inv = inv * (2.0 - denom * inv)                     # one Newton step -> ~exact
    out_ref[...] = (e * inv).astype(out_ref.dtype)


def pack_params(w1, b1, w2, b2):
    """Build the VMEM-resident parameter slabs ONCE (call at init time).

    Weights stored (in, out).  Returns (w_pack[bf16], b_pack[f32], meta).
    """
    n_states, hidden = w1.shape
    n_actions = w2.shape[1]
    lw = 128 * pl.cdiv(max(hidden, n_actions), 128)     # lane-dense common width
    ns_pad = _round_up(n_states, 8)                      # sublane-aligned W1/W2 split

    w1_p = jnp.pad(w1.astype(jnp.float32), ((0, ns_pad - n_states), (0, lw - hidden)))
    w2_p = jnp.pad(w2.astype(jnp.float32), ((0, lw - hidden), (0, lw - n_actions)))
    w_pack = jnp.concatenate([w1_p, w2_p], axis=0).astype(jnp.bfloat16)  # (ns_pad+lw, lw)

    b1_p = jnp.pad(b1.reshape(1, -1).astype(jnp.float32), ((0, 0), (0, lw - hidden)))
    b2_p = jnp.pad(b2.reshape(1, -1).astype(jnp.float32), ((0, 0), (0, lw - n_actions)),
                   constant_values=-jnp.inf)
    b_pack = jnp.concatenate([b1_p, b2_p], axis=0)                        # (2, lw) f32

    meta = dict(n_states=n_states, ns_pad=ns_pad, lw=lw,
                hidden=hidden, n_actions=n_actions)
    return w_pack, b_pack, meta


def actor_critic_forward_packed(x, w_pack, b_pack, meta, *,
                                block_b: int = 2048, out_dtype=jnp.float32):
    """Fused forward pass using pre-packed parameter slabs.  x: (B, n_states)."""
    B, n_states = x.shape
    assert n_states == meta["n_states"]
    ns_pad, lw, n_actions = meta["ns_pad"], meta["lw"], meta["n_actions"]

    # --- tile selection -------------------------------------------------------
    # >= 2 grid steps when possible (megacore on v7x), 8-aligned rows, sized so the
    # last tile isn't mostly padding.  No explicit jnp.pad of x: Pallas handles the
    # partial last block (OOB rows undefined on read, discarded on write; all math
    # here is row-independent so that is safe).
    n_steps = max(2, pl.cdiv(B, block_b))
    tb = _round_up(pl.cdiv(B, n_steps), 8)
    if tb >= B:
        tb = B                                          # tiny batch: one full-extent block
    grid_b = pl.cdiv(B, tb)

    # --- VMEM budget (double-buffered x/out blocks + f32 temps + resident params)
    out_isz = jnp.dtype(out_dtype).itemsize
    vmem_est = (2 * tb * n_states * 4                   # x blocks (f32)
                + 2 * tb * lw * out_isz                 # out blocks
                + 4 * tb * lw * 4                       # h / logits / e / f32 out temp
                + (ns_pad + lw) * lw * 2                # bf16 weight slab
                + 2 * lw * 4)                           # bias slab
    vmem_limit = int(min(max(2 * vmem_est, 16 << 20), 48 << 20))

    cost = pl.CostEstimate(
        flops=2 * B * (n_states + lw) * lw,
        transcendentals=B * lw,
        bytes_accessed=B * n_states * 4 + B * lw * out_isz
                       + (ns_pad + lw) * lw * 2 + 2 * lw * 4,
    )

    kernel = functools.partial(_actor_critic_kernel,
                               n_states=n_states, ns_pad=ns_pad, lw=lw)

    out = pl.pallas_call(
        kernel,
        out_shape=jax.ShapeDtypeStruct((B, lw), out_dtype),
        grid=(grid_b,),
        in_specs=[
            pl.BlockSpec((tb, n_states), lambda i: (i, 0)),          # batch-tiled x
            pl.BlockSpec((ns_pad + lw, lw), lambda i: (0, 0)),       # resident bf16 weights
            pl.BlockSpec((2, lw), lambda i: (0, 0)),                 # resident f32 biases
        ],
        out_specs=pl.BlockSpec((tb, lw), lambda i: (i, 0)),          # lane-dense output
        compiler_params=pltpu.CompilerParams(
            dimension_semantics=("parallel",),                       # 2 TCs on v7x
            vmem_limit_bytes=vmem_limit,
        ),
        cost_estimate=cost,
    )(x, w_pack, b_pack)

    return out[:, :n_actions]


def actor_critic_forward(x, w1, b1, w2, b2, *, block_b: int = 2048):
    """Convenience wrapper (packs params per call; prefer pack_params once + _packed)."""
    w_pack, b_pack, meta = pack_params(w1, b1, w2, b2)
    return actor_critic_forward_packed(x, w_pack, b_pack, meta, block_b=block_b)


def init_params(key, n_states, n_actions, hidden=128):
    """nn.Linear-style uniform(-1/sqrt(fan_in), 1/sqrt(fan_in)); weights (in, out)."""
    k1, k2, k3, k4 = jax.random.split(key, 4)
    bound1 = 1.0 / jnp.sqrt(n_states)
    bound2 = 1.0 / jnp.sqrt(hidden)
    w1 = jax.random.uniform(k1, (n_states, hidden), jnp.float32, -bound1, bound1)
    b1 = jax.random.uniform(k2, (hidden,), jnp.float32, -bound1, bound1)
    w2 = jax.random.uniform(k3, (hidden, n_actions), jnp.float32, -bound2, bound2)
    b2 = jax.random.uniform(k4, (n_actions,), jnp.float32, -bound2, bound2)
    return w1, b1, w2, b2


def reference_forward_bf16(x, w1, b1, w2, b2):
    """Pure-JAX reference mirroring the kernel's bf16-matmul / f32-elementwise math."""
    xb, w1b, w2b = x.astype(jnp.bfloat16), w1.astype(jnp.bfloat16), w2.astype(jnp.bfloat16)
    h = jnp.maximum(jnp.dot(xb, w1b, preferred_element_type=jnp.float32) + b1, 0.0)
    logits = jnp.dot(h.astype(jnp.bfloat16), w2b, preferred_element_type=jnp.float32) + b2
    return jax.nn.softmax(logits, axis=-1)


def reference_forward_f32(x, w1, b1, w2, b2):
    """Full-precision reference matching the original PyTorch module semantics."""
    h = jax.nn.relu(x @ w1 + b1)
    return jax.nn.softmax(h @ w2 + b2, axis=-1)


if __name__ == "__main__":
    n_states = 32
    n_actions = 8
    batch = 84  # not 8-aligned and not tile-aligned -> exercises the partial last block

    key = jax.random.PRNGKey(0)
    kx, kp = jax.random.split(key)
    x = jax.random.normal(kx, (batch, n_states), jnp.float32)
    w1, b1, w2, b2 = init_params(kp, n_states, n_actions)

    # Pack / pad / bf16-cast the parameters once (init-time cost, not per-call).
    w_pack, b_pack, meta = pack_params(w1, b1, w2, b2)

    out = actor_critic_forward_packed(x, w_pack, b_pack, meta)
    out = jax.block_until_ready(out)

    assert out.shape == (batch, n_actions)

    ref_bf16 = reference_forward_bf16(x, w1, b1, w2, b2)
    assert jnp.allclose(out, ref_bf16, atol=1e-4, rtol=1e-4), \
        "mismatch vs bf16-matched pure-JAX reference"

    ref_f32 = reference_forward_f32(x, w1, b1, w2, b2)
    assert jnp.allclose(out, ref_f32, atol=2e-2, rtol=2e-2), \
        "mismatch vs full-f32 reference (beyond bf16 matmul tolerance)"

    assert jnp.allclose(jnp.sum(out, axis=-1), 1.0, atol=1e-5), \
        "softmax rows must sum to 1"

    print("KERNEL_OK")
</pallas_src>

<mosaic_0001>
module attributes {stable_mosaic.version = 11 : i64} {
  func.func @_actor_critic_kernel(%arg0: i32, %arg1: memref<48x32xf32, #tpu.memory_space<vmem>>, %arg2: memref<160x128xbf16, #tpu.memory_space<vmem>>, %arg3: memref<2x128xf32, #tpu.memory_space<vmem>>, %arg4: memref<48x128xf32, #tpu.memory_space<vmem>>) attributes {dimension_semantics = [#tpu.dimension_semantics<parallel>], iteration_bounds = array<i64: 2>, scalar_prefetch = 0 : i64, scratch_operands = 0 : i64, tpu.core_type = #tpu.core_type<tc>, window_params = [{transform_indices = @transform_0, window_bounds = array<i64: 48, 32>}, {pipeline_mode = #tpu.pipeline_mode<synchronous>, transform_indices = @transform_1, window_bounds = array<i64: 160, 128>}, {pipeline_mode = #tpu.pipeline_mode<synchronous>, transform_indices = @transform_2, window_bounds = array<i64: 2, 128>}, {transform_indices = @transform_3, window_bounds = array<i64: 48, 128>}]} {
    %c0 = arith.constant 0 : index
    %c0_0 = arith.constant 0 : index
    %0 = vector.load %arg1[%c0, %c0_0] : memref<48x32xf32, #tpu.memory_space<vmem>>, vector<48x32xf32>
    %1 = arith.truncf %0 : vector<48x32xf32> to vector<48x32xbf16>
    %c0_1 = arith.constant 0 : index
    %c0_2 = arith.constant 0 : index
    %2 = vector.load %arg2[%c0_1, %c0_2] : memref<160x128xbf16, #tpu.memory_space<vmem>>, vector<32x128xbf16>
    %c32 = arith.constant 32 : index
    %c0_3 = arith.constant 0 : index
    %3 = vector.load %arg2[%c32, %c0_3] : memref<160x128xbf16, #tpu.memory_space<vmem>>, vector<128x128xbf16>
    %c0_4 = arith.constant 0 : index
    %c0_5 = arith.constant 0 : index
    %4 = vector.load %arg3[%c0_4, %c0_5] : memref<2x128xf32, #tpu.memory_space<vmem>>, vector<1x128xf32>
    %c1 = arith.constant 1 : index
    %c0_6 = arith.constant 0 : index
    %5 = vector.load %arg3[%c1, %c0_6] : memref<2x128xf32, #tpu.memory_space<vmem>>, vector<1x128xf32>
    %cst = arith.constant dense<0.000000e+00> : vector<48x128xf32>
    %6 = tpu.matmul %1, %2, %cst {dimension_numbers = #tpu.dot_dimension_numbers<[1], [0], [0], [1], [0, 0, 1, 1], [], []>} : vector<48x32xbf16>, vector<32x128xbf16>, vector<48x128xf32> -> vector<48x128xf32>
    %7 = vector.broadcast %4 : vector<1x128xf32> to vector<48x128xf32>
    %8 = arith.addf %6, %7 : vector<48x128xf32>
    %cst_7 = arith.constant 0.000000e+00 : f32
    %9 = vector.broadcast %cst_7 : f32 to vector<48x128xf32>
    %10 = arith.maximumf %8, %9 : vector<48x128xf32>
    %11 = arith.truncf %10 : vector<48x128xf32> to vector<48x128xbf16>
    %cst_8 = arith.constant dense<0.000000e+00> : vector<48x128xf32>
    %12 = tpu.matmul %11, %3, %cst_8 {dimension_numbers = #tpu.dot_dimension_numbers<[1], [0], [0], [1], [0, 0, 1, 1], [], []>} : vector<48x128xbf16>, vector<128x128xbf16>, vector<48x128xf32> -> vector<48x128xf32>
    %13 = vector.broadcast %5 : vector<1x128xf32> to vector<48x128xf32>
    %14 = arith.addf %12, %13 : vector<48x128xf32>
    %cst_9 = arith.constant dense<0xFF800000> : vector<48xf32>
    %15 = vector.multi_reduction <maximumf>, %14, %cst_9 [1] : vector<48x128xf32> to vector<48xf32>
    %16 = vector.shape_cast %15 : vector<48xf32> to vector<48x1xf32>
    %17 = vector.broadcast %16 : vector<48x1xf32> to vector<48x128xf32>
    %18 = arith.subf %14, %17 : vector<48x128xf32>
    %19 = math.exp %18 : vector<48x128xf32>
    %cst_10 = arith.constant dense<0.000000e+00> : vector<48xf32>
    %20 = vector.multi_reduction <add>, %19, %cst_10 [1] : vector<48x128xf32> to vector<48xf32>
    %21 = vector.shape_cast %20 : vector<48xf32> to vector<48x1xf32>
    %22 = tpu.reciprocal %21 {approx = true} : vector<48x1xf32> -> vector<48x1xf32>
    %23 = arith.mulf %21, %22 : vector<48x1xf32>
    %cst_11 = arith.constant 2.000000e+00 : f32
    %24 = vector.broadcast %cst_11 : f32 to vector<48x1xf32>
    %25 = arith.subf %24, %23 : vector<48x1xf32>
    %26 = arith.mulf %22, %25 : vector<48x1xf32>
    %27 = vector.broadcast %26 : vector<48x1xf32> to vector<48x128xf32>
    %28 = arith.mulf %19, %27 : vector<48x128xf32>
    %c0_12 = arith.constant 0 : index
    %c0_13 = arith.constant 0 : index
    %29 = vector.load %arg4[%c0_12, %c0_13] : memref<48x128xf32, #tpu.memory_space<vmem>>, vector<48x128xf32>
    tpu.vector_store %arg4[%c0_12, %c0_13], %28 {strides = array<i32>} : memref<48x128xf32, #tpu.memory_space<vmem>>, vector<48x128xf32>,
    return
  }
  func.func @transform_0(%arg0: i32) -> (i32, i32) {
    %c0_i32 = arith.constant 0 : i32
    %c0_i32_0 = arith.constant 0 : i32
    return %arg0, %c0_i32 : i32, i32
  }
  func.func @transform_1(%arg0: i32) -> (i32, i32) {
    %c0_i32 = arith.constant 0 : i32
    %c0_i32_0 = arith.constant 0 : i32
    %c0_i32_1 = arith.constant 0 : i32
    return %c0_i32, %c0_i32_0 : i32, i32
  }
  func.func @transform_2(%arg0: i32) -> (i32, i32) {
    %c0_i32 = arith.constant 0 : i32
    %c0_i32_0 = arith.constant 0 : i32
    %c0_i32_1 = arith.constant 0 : i32
    return %c0_i32, %c0_i32_0 : i32, i32
  }
  func.func @transform_3(%arg0: i32) -> (i32, i32) {
    %c0_i32 = arith.constant 0 : i32
    %c0_i32_0 = arith.constant 0 : i32
    return %arg0, %c0_i32 : i32, i32
  }
}

</mosaic_0001>

<bundles_post_ra>
// kernel: tpu_custom_call.1
= control target key start
LH: loop header
LB: loop body
LE: loop exit
PB: predicated region body
PF: predicated region fallthrough
CT: control target
= control target key end

     0   :  { %8 = vsyncpa [#allocation3], 0  ;;  %s1055_s0 = inlined_call_operand.vmem [shape: f32[84,32], index: 0, kind: input, shape index: {}]   ;;  %s1056_s1 = inlined_call_operand.vmem [shape: bf16[160,128], index: 1, kind: input, shape index: {}]   ;;  %s1057_s2 = inlined_call_operand.vmem [shape: f32[2,128], index: 2, kind: input, shape index: {}]   ;;  %s1058_s3 = inlined_call_operand.hbm [shape: f32[84,128], index: 3, kind: output, shape index: {}]  }
   0x1   :  { %10 = vsyncpa [#allocation3 + $0x1], 0  ;;  %s857_s12 = smov 0   ;;  %s859_s13 = smov 0  }
   0x2   :  { %s861_s14 = smov 0   ;;  %s863_s15 = smov 0  }
   0x3 LB: > { %s878_s16 = sadd.s32 4294967295, %s830_s15   ;;  %s589_s17 = sadd.s32 4294967294, %s830_s15   ;;  %s830_s15 = sphi %s863_s15, %s1064_s15   ;;  %s826_s14 = sphi %s861_s14, %s1063_s14   ;;  %s822_s13 = sphi %s859_s13, %s1062_s13   ;;  %s818_s12 = sphi %s857_s12, %s1061_s12  }
   0x4   : > { %s882_s18 = sadd.s32 1, %s830_s15   ;;  %s91_s19 = sadd.s32 1, %s826_s14 }
   0x5   : > { %s88_s20 = ssub.s32 %s830_s15, %s882_s18  ;;  %p101_p0 = scmp.ne.s32.totalorder %s826_s14, %s822_s13 }
   0x6   : > { %p89_p1 = scmp.eq.s32.totalorder %s88_s20, 0  ;;  %p102_p2 = scmp.eq.s32.totalorder %s878_s16, 1 }
   0x7   : > { %p107_p3 = scmp.ne.s32.totalorder %s822_s13, %s818_s12  ;;  %p108_p4 = scmp.eq.s32.totalorder %s589_s17, 1 }
   0x8   : > { %s893_s21 = scalar_select %p89_p1, %s826_s14, %s91_s19  }
   0x9   : > { %p895_p5 = por %p102_p2, %p101_p0  ;;  %p899_p6 = por %p108_p4, %p107_p3 }
   0xa   : > { %p592_p7 = scmp.ge.s32.totalorder %s830_s15, 1  ;;  %p149_p8 = scmp.lt.s32.totalorder %s830_s15, 3 }
   0xc   : > { %p150_p9 = pnand %p592_p7, %p149_p8 }
   0xd   : > { %s916_s28 = smul.u32 (!%p150_p9), 6, %s878_s16 }
   0xe   : > { %153 = sbr.rel (%p150_p9) target bundleno = 790 (0x316), region = 32 }
   0xf   : > { %p182_p10 = scmp.lt.s32.totalorder (!%p150_p9), %s916_s28, 10 }
  0x13   : > { %v736_v0 = vld [vmem:[%s1056_s1 + $0x8] sm:$0xff]   ;;  %v832_v1 = vmov 0.0   ;;  %v737_v2 = vld [vmem:[%s1056_s1] sm:$0xff]   ;;  %vm833_vm0 = vmmov 0   ;;  %s183_s4 = scalar_select %p182_p10, %s916_s28, 10  ;;  %vm244_vm1 = vcmask 261120  }
  0x14   : > { %633 = vmatprep.subr.bf16.mxu0 %v832_v1  ;;  %677 = vmatprep.subr.bf16.mxu1 %v832_v1  ;;  %v738_v3 = vld [vmem:[%s1056_s1 + $0x48] sm:$0xff]   ;;  %v739_v4 = vld [vmem:[%s1056_s1 + $0x40] sm:$0xff]   ;;  %v740_v8 = vld [vmem:[%s1056_s1 + $0x38] sm:$0xff]   ;;  %s516_s20 = ssub.s32 (%p895_p5), 11, %s916_s28 }
  0x15   : > { %634 = vmatpush3.bf16.msra.mxu0 %v736_v0  ;;  %637 = vmatprep.mubr.msk.bf16.mxu0 %vm833_vm0, %v832_v1  ;;  %s593_s7 = sshll.u32 %s183_s4, 3  ;;  %v741_v11 = vld [vmem:[%s1056_s1 + $0x30] sm:$0xff]   ;;  %v742_v13 = vld [vmem:[%s1056_s1 + $0x28] sm:$0xff]   ;;  %v743_v17 = vld [vmem:[%s1056_s1 + $0x20] sm:$0xff]   ;;  %p517_p11 = scmp.lt.s32.totalorder (%p895_p5), %s516_s20, 6 }
  0x16   : > { %635 = vmatprep.subr.bf16.mxu0 %v832_v1  ;;  %669 = vmatprep.mubr.msk.bf16.mxu1 %vm833_vm0, %v832_v1  ;;  %s185_s10 = scalar_lea.vmem %s1055_s0, %s593_s7  ;;  %v744_v18 = vld [vmem:[%s1056_s1 + $0x18] sm:$0xff]   ;;  %v745_v19 = vld [vmem:[%s1056_s1 + $0x10] sm:$0xff]   ;;  %v594_v20 = vld [vmem:[%s1057_s2] ss:$0 sm:$0xff] }
  0x17   : > { %685 = vmatpush3.bf16.msra.mxu1 %v738_v3  ;;  %v197_v5 = vld [vmem:[%s185_s10] sm:$0xff]  ;;  %v198_v6 = vld [vmem:[%s185_s10 + $0x8] sm:$0xff]  ;;  %v199_v9 = vld [vmem:[%s185_s10 + $0x10] sm:$0xff] }
  0x18   : > { %678 = vmatprep.subr.bf16.mxu1 %v832_v1  ;;  %v203_v7 = vpack.c.bf16 %v198_v6, %v197_v5  ;;  %v200_v10 = vld [vmem:[%s185_s10 + $0x18] sm:$0xff]  ;;  %v201_v14 = vld [vmem:[%s185_s10 + $0x20] sm:$0xff]  ;;  %v202_v15 = vld [vmem:[%s185_s10 + $0x28] sm:$0xff]  ;;  %s174_s10 = sand.u32 1, %s822_s13  }
  0x19   : > { %636 = vmatpush3.bf16.msra.mxu0 %v737_v2  ;;  %v204_v12 = vpack.c.bf16 %v200_v10, %v199_v9  ;;  %v205_v16 = vpack.c.bf16 %v202_v15, %v201_v14  ;;  %v600_v48 = vld [vmem:[%s1057_s2 + $0x1] ss:$0 sm:$0xff]  ;;  %s693_s11 = smul.u32 48, %s174_s10  ;;  %s995_s19 = scalar_lea.sflag [#allocation3], %s174_s10 }
  0x1a   : > { %649 = vmatprep.subr.bf16.mxu0 %v832_v1 }
  0x1b   : > { %686 = vmatpush3.bf16.msra.mxu1 %v739_v4  ;;  %s985_s17 = scalar_lea.vmem [#allocation2], %s693_s11 }
  0x1c   : > { %679 = vmatprep.subr.bf16.mxu1 %v832_v1  ;;  %638 = vmatmul.mubr.msk.bf16.vlgmr.msra.gmra.mxu0 %vm244_vm1, %v203_v7 }
  0x1d   : > { %641 = vmatprep.mubr.msk.bf16.mxu0 %vm833_vm0, %v832_v1  ;;  %650 = vmatpush3.bf16.msra.mxu0 %v738_v3 }
  0x1e   : > { %651 = vmatprep.subr.bf16.mxu0 %v832_v1 }
  0x1f   : > { %687 = vmatpush3.bf16.msra.mxu1 %v740_v8 }
  0x20   : > { %680 = vmatprep.subr.bf16.mxu1 %v832_v1 }
  0x21   : > { %652 = vmatpush3.bf16.msra.mxu0 %v739_v4 }
  0x22   : > { %653 = vmatprep.subr.bf16.mxu0 %v832_v1 }
  0x23   : > { %688 = vmatpush3.bf16.msra.mxu1 %v741_v11 }
  0x24   : > { %681 = vmatprep.subr.bf16.mxu1 %v832_v1  ;;  %642 = vmatmul.mubr.msk.bf16.gmra.mxu0 %vm244_vm1, %v204_v12 }
  0x25   : > { %645 = vmatprep.mubr.msk.bf16.mxu0 %vm833_vm0, %v832_v1  ;;  %654 = vmatpush3.bf16.msra.mxu0 %v740_v8 }
  0x26   : > { %655 = vmatprep.subr.bf16.mxu0 %v832_v1 }
  0x27   : > { %689 = vmatpush3.bf16.msra.mxu1 %v742_v13 }
  0x28   : > { %682 = vmatprep.subr.bf16.mxu1 %v832_v1 }
  0x29   : > { %656 = vmatpush3.bf16.msra.mxu0 %v741_v11 }
  0x2a   : > { %657 = vmatprep.subr.bf16.mxu0 %v832_v1 }
  0x2b   : > { %690 = vmatpush3.bf16.msra.mxu1 %v743_v17 }
  0x2c   : > { %646 = vmatmul.mubr.msk.bf16.gmra.mxu0 %vm244_vm1, %v205_v16  ;;  %683 = vmatprep.subr.bf16.mxu1 %v832_v1 }
  0x2d   : > { %658 = vmatpush3.bf16.msra.mxu0 %v742_v13  ;;  %665 = vmatprep.mubr.msk.bf16.mxu0 %vm833_vm0, %v832_v1 }
  0x2e   : > { %659 = vmatprep.subr.bf16.mxu0 %v832_v1 }
  0x2f   : > { %691 = vmatpush3.bf16.msra.mxu1 %v744_v18 }
  0x30   : > { %684 = vmatprep.subr.bf16.mxu1 %v832_v1 }
  0x31   : > { %660 = vmatpush3.bf16.msra.mxu0 %v743_v17 }
  0x32   : > { %661 = vmatprep.subr.bf16.mxu0 %v832_v1 }
  0x33   : > { %692 = vmatpush3.bf16.msra.mxu1 %v745_v19 }
  0x35   : > { %662 = vmatpush3.bf16.msra.mxu0 %v744_v18 }
  0x36   : > { %663 = vmatprep.subr.bf16.mxu0 %v832_v1 }
  0x39   : > { %664 = vmatpush3.bf16.msra.mxu0 %v745_v19 }
  0xdc   : > { %v288_v21 = vpop.f32.mrf.mxu0 }
  0xdd   : > { %v289_v23 = vadd.f32 %v594_v20, %v288_v21 }
  0xde   : > { %v639_v22 = vpop.f32.mrf.mxu0 }
  0xdf   : > { %v311_v27 = vmax.f32 %v289_v23, 0.0 }
  0xe0   : > { %v291_v24 = vpop.f32.mrf.mxu0 }
  0xe1   : > { %v292_v25 = vadd.f32 %v594_v20, %v291_v24 }
  0xe2   : > { %v640_v26 = vpop.f32.mrf.mxu0 }
  0xe3   : > { %v312_v28 = vmax.f32 %v292_v25, 0.0 }
  0xe4   : > { %v296_v29 = vpop.f32.mrf.mxu0 }
  0xe5   : > { %v317_v30 = vpack.c.bf16 %v312_v28, %v311_v27  ;;  %v297_v32 = vadd.f32 %v594_v20, %v296_v29 }
  0xe6   : > { %v643_v31 = vpop.f32.mrf.mxu0 }
  0xe7   : > { %666 = vmatmul.mubr.bf16.vlgmr.msra.gmra.mxu0 %v317_v30  ;;  %v313_v36 = vmax.f32 %v297_v32, 0.0 }
  0xe8   : > { %v299_v33 = vpop.f32.mrf.mxu0 }
  0xe9   : > { %v300_v34 = vadd.f32 %v594_v20, %v299_v33 }
  0xea   : > { %v644_v35 = vpop.f32.mrf.mxu0 }
  0xeb   : > { %v314_v37 = vmax.f32 %v300_v34, 0.0 }
  0xec   : > { %v304_v38 = vpop.f32.mrf.mxu0 }
  0xed   : > { %v318_v39 = vpack.c.bf16 %v314_v37, %v313_v36  ;;  %v305_v41 = vadd.f32 %v594_v20, %v304_v38 }
  0xee   : > { %v647_v40 = vpop.f32.mrf.mxu0 }
  0xef   : > { %670 = vmatmul.mubr.bf16.vlgmr.msra.gmra.mxu1 %v318_v39  ;;  %v315_v45 = vmax.f32 %v305_v41, 0.0 }
  0xf0   : > { %v307_v42 = vpop.f32.mrf.mxu0  ;;  %673 = vmatprep.mubr.msk.bf16.mxu1 %vm833_vm0, %v832_v1 }
  0xf1   : > { %v308_v43 = vadd.f32 %v594_v20, %v307_v42 }
  0xf2   : > { %v648_v44 = vpop.f32.mrf.mxu0 }
  0xf3   : > { %v316_v46 = vmax.f32 %v308_v43, 0.0 }
  0xf5   : > { %v319_v47 = vpack.c.bf16 %v316_v46, %v315_v45 }
  0xf7   : > { %674 = vmatmul.mubr.bf16.gmra.mxu1 %v319_v47 }
 0x1a7   : > { %v406_v49 = vpop.f32.mrf.mxu0 }
 0x1a8   : > { %v407_v50 = vadd.f32 %v600_v48, %v406_v49 }
 0x1a9   : > { %v667_v51 = vpop.f32.mrf.mxu0 }
 0x1aa   : > { %429 = vmax.xlane.f32.xlu0 %v407_v50 }
 0x1ab   : > { %v409_v52 = vpop.f32.mrf.mxu0 }
 0x1ac   : > { %v410_v53 = vadd.f32 %v600_v48, %v409_v52 }
 0x1ad   : > { %v668_v54 = vpop.f32.mrf.mxu0 }
 0x1ae   : > { %431 = vmax.xlane.f32.xlu0 %v410_v53 }
 0x1af   : > { %v414_v55 = vpop.f32.mrf.mxu1 }
 0x1b0   : > { %v415_v56 = vadd.f32 %v600_v48, %v414_v55 }
 0x1b1   : > { %v671_v57 = vpop.f32.mrf.mxu1 }
 0x1b2   : > { %433 = vmax.xlane.f32.xlu1 %v415_v56 }
 0x1b3   : > { %v417_v58 = vpop.f32.mrf.mxu1 }
 0x1b4   : > { %v418_v59 = vadd.f32 %v600_v48, %v417_v58 }
 0x1b5   : > { %v672_v60 = vpop.f32.mrf.mxu1 }
 0x1b6   : > { %435 = vmax.xlane.f32.xlu1 %v418_v59 }
 0x1b7   : > { %v422_v61 = vpop.f32.mrf.mxu1 }
 0x1b8   : > { %v423_v62 = vadd.f32 %v600_v48, %v422_v61 }
 0x1b9   : > { %v675_v63 = vpop.f32.mrf.mxu1 }
 0x1ba   : > { %437 = vmax.xlane.f32.xlu0 %v423_v62 }
 0x1bb   : > { %v425_v0 = vpop.f32.mrf.mxu1 }
 0x1bc   : > { %v426_v1 = vadd.f32 %v600_v48, %v425_v0 }
 0x1bd   : > { %v676_v2 = vpop.f32.mrf.mxu1 }
 0x1be   : > { %439 = vmax.xlane.f32.xlu1 %v426_v1 }
 0x233   : > { %v430_v3 = vpop.xlane.xlu0 %429 }
 0x234   : > { %v441_v4 = vsub.f32 %v407_v50, %v430_v3 }
 0x236   : > { %v447_v5 = vmul.f32 1.442695, %v441_v4 }
 0x237   : > { %v432_v6 = vpop.xlane.xlu0 %431 }
 0x238   : > { %746 = vpow2.f32 %v447_v5  ;;  %v442_v7 = vsub.f32 %v410_v53, %v432_v6 }
 0x23a   : > { %v449_v8 = vmul.f32 1.442695, %v442_v7 }
 0x23b   : > { %v434_v9 = vpop.xlane.xlu1 %433 }
 0x23c   : > { %748 = vpow2.f32 %v449_v8  ;;  %v443_v10 = vsub.f32 %v415_v56, %v434_v9 }
 0x23e   : > { %v451_v11 = vmul.f32 1.442695, %v443_v10 }
 0x23f   : > { %v436_v12 = vpop.xlane.xlu1 %435 }
 0x240   : > { %750 = vpow2.f32 %v451_v11  ;;  %v444_v13 = vsub.f32 %v418_v59, %v436_v12 }
 0x242   : > { %v453_v14 = vmul.f32 1.442695, %v444_v13 }
 0x243   : > { %v438_v15 = vpop.xlane.xlu0 %437 }
 0x244   : > { %752 = vpow2.f32 %v453_v14  ;;  %v445_v16 = vsub.f32 %v423_v62, %v438_v15 }
 0x245   : > { %v747_v17 = vpop.eup %746 }
 0x246   : > { %v455_v18 = vmul.f32 1.442695, %v445_v16  ;;  %459 = vadd.xlane.f32.xlu0 %v747_v17 }
 0x247   : > { %v440_v19 = vpop.xlane.xlu1 %439 }
 0x248   : > { %754 = vpow2.f32 %v455_v18  ;;  %v446_v20 = vsub.f32 %v426_v1, %v440_v19 }
 0x249   : > { %v749_v21 = vpop.eup %748 }
 0x24a   : > { %v457_v22 = vmul.f32 1.442695, %v446_v20  ;;  %461 = vadd.xlane.f32.xlu1 %v749_v21 }
 0x24c   : > { %756 = vpow2.f32 %v457_v22 }
 0x24d   : > { %v751_v23 = vpop.eup %750 }
 0x24e   : > { %463 = vadd.xlane.f32.xlu0 %v751_v23 }
 0x251   : > { %v753_v24 = vpop.eup %752 }
 0x252   : > { %465 = vadd.xlane.f32.xlu1 %v753_v24 }
 0x255   : > { %v755_v25 = vpop.eup %754 }
 0x256   : > { %467 = vadd.xlane.f32.xlu0 %v755_v25 }
 0x259   : > { %v757_v26 = vpop.eup %756 }
 0x25a   : > { %469 = vadd.xlane.f32.xlu1 %v757_v26 }
 0x2cf   : > { %v460_v27 = vpop.xlane.xlu0 %459 }
 0x2d0   : > { %758 = vrcp.f32 %v460_v27 }
 0x2d3   : > { %v462_v28 = vpop.xlane.xlu1 %461 }
 0x2d4   : > { %760 = vrcp.f32 %v462_v28 }
 0x2d7   : > { %v464_v29 = vpop.xlane.xlu0 %463 }
 0x2d8   : > { %762 = vrcp.f32 %v464_v29 }
 0x2db   : > { %v466_v30 = vpop.xlane.xlu1 %465 }
 0x2dc   : > { %764 = vrcp.f32 %v466_v30 }
 0x2dd   : > { %v759_v31 = vpop.eup %758 }
 0x2de   : > { %v477_v32 = vmul.f32 %v759_v31, %v460_v27 }
 0x2df   : > { %v468_v33 = vpop.xlane.xlu0 %467 }
 0x2e0   : > { %v483_v34 = vsub.f32 2.0, %v477_v32  ;;  %766 = vrcp.f32 %v468_v33 }
 0x2e1   : > { %v761_v35 = vpop.eup %760 }
 0x2e2   : > { %v489_v36 = vmul.f32 %v759_v31, %v483_v34  ;;  %v478_v37 = vmul.f32 %v761_v35, %v462_v28 }
 0x2e3   : > { %v470_v38 = vpop.xlane.xlu1 %469 }
 0x2e4   : > { %v495_v39 = vmul.f32 %v747_v17, %v489_v36  ;;  %v484_v40 = vsub.f32 2.0, %v478_v37  ;;  %768 = vrcp.f32 %v470_v38 }
 0x2e5   : > { %v763_v41 = vpop.eup %762 }
 0x2e6   : > { %501 = vst [vmem:[%s985_s17] sm:$0xff] %v495_v39  ;;  %v490_v42 = vmul.f32 %v761_v35, %v484_v40  ;;  %v479_v43 = vmul.f32 %v763_v41, %v464_v29 }
 0x2e8   : > { %v496_v44 = vmul.f32 %v749_v21, %v490_v42  ;;  %v485_v45 = vsub.f32 2.0, %v479_v43 }
 0x2e9   : > { %v765_v46 = vpop.eup %764 }
 0x2ea   : > { %502 = vst [vmem:[%s985_s17 + $0x8] sm:$0xff] %v496_v44  ;;  %v491_v47 = vmul.f32 %v763_v41, %v485_v45  ;;  %v480_v48 = vmul.f32 %v765_v46, %v466_v30 }
 0x2ec   : > { %v497_v49 = vmul.f32 %v751_v23, %v491_v47  ;;  %v486_v50 = vsub.f32 2.0, %v480_v48 }
 0x2ed   : > { %v767_v51 = vpop.eup %766 }
 0x2ee   : > { %503 = vst [vmem:[%s985_s17 + $0x10] sm:$0xff] %v497_v49  ;;  %v492_v52 = vmul.f32 %v765_v46, %v486_v50  ;;  %v481_v53 = vmul.f32 %v767_v51, %v468_v33 }
 0x2f0   : > { %v498_v54 = vmul.f32 %v753_v24, %v492_v52  ;;  %v487_v55 = vsub.f32 2.0, %v481_v53 }
 0x2f1   : > { %v769_v56 = vpop.eup %768 }
 0x2f2   : > { %504 = vst [vmem:[%s985_s17 + $0x18] sm:$0xff] %v498_v54  ;;  %v493_v57 = vmul.f32 %v767_v51, %v487_v55  ;;  %v482_v58 = vmul.f32 %v769_v56, %v470_v38 }
 0x2f4   : > { %v499_v59 = vmul.f32 %v755_v25, %v493_v57  ;;  %v488_v60 = vsub.f32 2.0, %v482_v58 }
 0x2f6   : > { %505 = vst [vmem:[%s985_s17 + $0x20] sm:$0xff] %v499_v59  ;;  %v494_v61 = vmul.f32 %v769_v56, %v488_v60  ;;  %514 = sbr.rel (!%p895_p5) target bundleno = 790 (0x316), region = 36 }
 0x2f8   : > { %v500_v62 = vmul.f32 %v757_v26, %v494_v61 }
 0x2fa   : > { %506 = vst [vmem:[%s985_s17 + $0x28] sm:$0xff] %v500_v62 }
 0x2fb   : > { %s1066_s20 = smov (!%p517_p11, %s516_s20), 6 }
 0x2fc   : > { %s1000_s24 = sshll.u32 %s1066_s20, 7 }
 0x2fd   : > { %s521_s25 = ssub.s32 768, %s1000_s24 }
 0x2fe   : > { %522 = vsyncadd %s995_s19, %s521_s25  ;;  %p610_p12 = scmp.ne.s32.totalorder %s1000_s24, 0  ;;  %s616_s26 = smul.u32 768, %s878_s16 }
 0x2ff   : > { %s527_s27 = sshll.u32 %s985_s17, 4  ;;  %s834_s4 = smov [#allocation2]   ;;  %s1012_s27 = int_to_ptr.vmem [resolvable:$true] %s527_s27 }
 0x300   : > { %s1010_s30 = scalar_lea.hbm %s1058_s3, %s616_s26  ;;  %s770_s28 = scalar_lea.vmem %s1012_s27, %s1000_s24 }
 0x301   : > { %p771_p13 = scmp.ne.s32.totalorder %s1012_s27, %s770_s28  ;;  %s774_s5 = sshll.u32 %s834_s4, 4  ;;  %s775_s5 = int_to_ptr.vmem [resolvable:$false] %s774_s5 }
 0x302   : > { %s776_s16 = scalar_lea.vmem %s775_s5, 1536  ;;  %p777_p2 = scmp.lt.s32.totalorder %s1012_s27, %s775_s5 }
 0x303   : > { %p772_p0 = pnand %p771_p13, %p610_p12  ;;  %p778_p3 = scmp.lt.s32.totalorder %s776_s16, %s770_s28 }
 0x305   : > { %p773_p1 = pneg %p772_p0  ;;  %p779_p4 = por %p778_p3, %p777_p2 }
 0x307   : > { %p780_p5 = pnand %p779_p4, %p773_p1 }
 0x309   : > { %783 = shalt.err (!%p780_p5)
}
 0x30a   : > { %s784_s6 = scalar_lea.hbm %s1010_s30, %s1000_s24  ;;  %s788_s9 = scalar_lea.hbm %s1058_s3, 1408 }
 0x30b   : > { %p785_p7 = scmp.ne.s32.totalorder %s1010_s30, %s784_s6  ;;  %p789_p10 = scmp.lt.s32.totalorder %s1010_s30, %s1058_s3 }
 0x30c   : > { %p790_p11 = scmp.lt.s32.totalorder %s788_s9, %s784_s6 }
 0x30d   : > { %p786_p8 = pnand %p785_p7, %p610_p12 }
 0x30e   : > { %p791_p13 = por %p790_p11, %p789_p10 }
 0x30f   : > { %p787_p9 = pneg %p786_p8 }
 0x311   : > { %p792_p0 = pnand %p791_p13, %p787_p9 }
 0x313   : > { %795 = shalt.err (!%p792_p0)
}
 0x314   : > { %s835_s17 = smov 128   ;;  %s836_s20 = smov 8  }
 0x315   : > { %533 = dma.vmem_to_hbm [thread:$0]  (%p610_p12), %s1012_s27, %s1000_s24, %s1010_s30, %s995_s19, %s835_s17, %s835_s17, %s836_s20  }
 0x316 PF: > { %p699_p1 = scmp.ge.s32.totalorder %s830_s15, 2  ;;  %s542_s25 = sand.u32 1, %s818_s12  }
 0x317   : > { %s543_s26 = scalar_lea.sflag [#allocation3], %s542_s25 }
 0x318   : > { %p696_p2 = pnand %p699_p1, %p899_p6 }
 0x31a   : > { %p697_p3 = pneg %p696_p2 }
 0x31c   : > { %813 = dma.done.wait (%p697_p3), %s543_s26, 768  }
 0x31d   : > { %815 = vsyncadd (%p697_p3), %s543_s26, 4294966528  ;;  %p13_p4 = scmp.ge.s32.totalorder %s882_s18, 4   ;;  %s1061_s12 = smov %s822_s13 }
 0x31e   : > { %s1062_s13 = smov %s826_s14  ;;  %s1063_s14 = smov %s893_s21 }
 0x31f   : > { %s1064_s15 = smov %s882_s18  ;;  %15 = sbr.rel (!%p13_p4) target bundleno = 3 (0x3), region = 67 }
 0x324   :  { %548 = vsyncpa [#allocation3], 1 }
 0x325   :  { %550 = vsyncpa [#allocation3 + $0x1], 1 }

</bundles_post_ra>
